<compile_context>
chip_gen: v6e
topology: v6e:2x2x1
jax: 0.10.0
libtpu: 0.0.40
codegen_flags: <defaults>
</compile_context>

<pallas_src>
import functools

import jax
import jax.numpy as jnp
from jax.experimental import pallas as pl
from jax.experimental.pallas import tpu as pltpu

LANE = 128  # lane width (last-dim granularity)


def _round_up(n, m):
    return ((n + m - 1) // m) * m


def _cdiv(a, b):
    return (a + b - 1) // b


def adapter_kernel(x_ref, wd_ref, bd_ref, wu_ref, bu_ref, o_ref):
    # x_ref:  (tm, Dp)  tile of tokens (row axis may have a partial last block)
    # wd_ref: (Dp, Hp)  down-projection weight (VMEM-resident across the grid)
    # bd_ref: (1, Hp)   down-projection bias (f32)
    # wu_ref: (Hp, Dp)  up-projection weight (VMEM-resident)
    # bu_ref: (1, Dp)   up-projection bias (f32)
    x = x_ref[...]
    z = jnp.dot(x, wd_ref[...], preferred_element_type=jnp.float32) + bd_ref[...]
    z = jnp.maximum(z, 0.0)                                    # ReLU on the VPU
    up = jnp.dot(z.astype(wu_ref.dtype), wu_ref[...],
                 preferred_element_type=jnp.float32)
    # Fold bu into the residual: a single VPU pass over the (tm, Dp) output.
    o_ref[...] = (x.astype(jnp.float32) + up + bu_ref[...]).astype(o_ref.dtype)


@functools.partial(jax.jit, static_argnames=("tm",))
def adapter_forward(x, wd, bd, wu, bu, *, tm=512):
    """Adapter forward.

    x:  (B, S, D)   activations (feed bf16 for the HBM-bound fast path)
    wd: (D, H)      down-proj weight (already transposed from PyTorch (H, D))
    bd: (H,)        down-proj bias
    wu: (H, D)      up-proj weight (already transposed from PyTorch (D, H))
    bu: (D,)        up-proj bias
    """
    B, S, D = x.shape
    H = wd.shape[1]
    N = B * S
    itemsize = x.dtype.itemsize
    # Sublane granularity depends on packing: f32 -> 8, bf16 -> 16, int8 -> 32.
    sub = 8 * max(1, 4 // itemsize)

    # Feature / bottleneck dims padded to lane multiples (exact: ReLU(0)=0 and
    # zero Wu rows/cols contribute nothing).  x only needs a feature pad when D
    # is not a lane multiple (garbage lanes would feed the K contraction).
    Dp = _round_up(max(D, LANE), LANE)
    Hp = _round_up(max(H, LANE), LANE)

    # Row tile: big enough to amortize the ~0.35us per-step overhead, shrunk for
    # tiny N, capped so double-buffered in+out tiles fit comfortably in VMEM on
    # v7x, and kept >= 2 row blocks where possible so both v7x TCs get work.
    tm_eff = min(tm, _round_up(N, sub))
    max_stream_bytes = 24 * 1024 * 1024          # 2x(in + out) tile budget
    tm_cap = max(sub, (max_stream_bytes // (4 * Dp * itemsize)) // sub * sub)
    tm_eff = min(tm_eff, tm_cap)
    if _cdiv(N, tm_eff) < 2 and N > sub:
        tm_eff = _round_up(_cdiv(N, 2), sub)
    grid_m = _cdiv(N, tm_eff)

    # Weights stream in the activation dtype (tiny one-time cast); biases stay
    # f32 and are added inside the f32 accumulation / residual.
    wd_p = jnp.pad(wd.astype(x.dtype), ((0, Dp - D), (0, Hp - H)))
    bd_p = jnp.pad(bd.astype(jnp.float32), (0, Hp - H)).reshape(1, Hp)
    wu_p = jnp.pad(wu.astype(x.dtype), ((0, Hp - H), (0, Dp - D)))
    bu_p = jnp.pad(bu.astype(jnp.float32), (0, Dp - D)).reshape(1, Dp)

    # No row-axis padding and no output row slice: the op is row-wise, so the
    # partial final block is safe (OOB rows masked on store).
    x2 = x.reshape(N, D)
    if Dp != D:
        x2 = jnp.pad(x2, ((0, 0), (0, Dp - D)))

    # Computed VMEM bound: double-buffered in+out tiles + double-buffered
    # (constant-index) weights, with 2x margin; capped at the 32 MiB scoped
    # default so the same code stays safe on v7x's 64 MiB physical VMEM.
    tile_bytes = tm_eff * Dp * itemsize
    w_bytes = (Dp * Hp + Hp * Dp) * wd_p.dtype.itemsize + (Hp + Dp) * 4
    footprint = 4 * tile_bytes + 2 * w_bytes
    vmem_limit = int(min(32 * 1024 * 1024, max(2 * footprint, 8 * 1024 * 1024)))

    out2 = pl.pallas_call(
        adapter_kernel,
        out_shape=jax.ShapeDtypeStruct((N, Dp), x.dtype),
        grid_spec=pltpu.PrefetchScalarGridSpec(
            num_scalar_prefetch=0,
            grid=(grid_m,),
            in_specs=[
                pl.BlockSpec((tm_eff, Dp), lambda i: (i, 0)),  # x tile (streamed)
                # Constant index maps keep weights/biases VMEM-resident.
                # (pl.Buffered(1) on these would halve their footprint; at well
                #  under 1 MiB here it is not worth the extra lowering surface.)
                pl.BlockSpec((Dp, Hp), lambda i: (0, 0)),      # Wd
                pl.BlockSpec((1, Hp), lambda i: (0, 0)),       # bd
                pl.BlockSpec((Hp, Dp), lambda i: (0, 0)),      # Wu
                pl.BlockSpec((1, Dp), lambda i: (0, 0)),       # bu
            ],
            out_specs=pl.BlockSpec((tm_eff, Dp), lambda i: (i, 0)),
        ),
        compiler_params=pltpu.CompilerParams(
            dimension_semantics=("parallel",),
            vmem_limit_bytes=vmem_limit,
        ),
    )(x2, wd_p, bd_p, wu_p, bu_p)

    if Dp != D:
        out2 = out2[:, :D]
    return out2.reshape(B, S, D)


def adapter_ref(x, wd, bd, wu, bu):
    z = jnp.maximum(x @ wd + bd, 0.0)
    return x + (z @ wu + bu)


if __name__ == "__main__":
    B, S = 2, 8
    down = 96  # down_sample_size fixed by the module

    # --- Test 1: f32, small dim (exercises the lane-padded D path) ----------
    dim = 32
    k_x, k_wd, k_wu = jax.random.split(jax.random.PRNGKey(0), 3)
    x = jax.random.normal(k_x, (B, S, dim), dtype=jnp.float32)
    # nn.Linear(dim, 96): weight (96, dim) ~ N(0, 0.01), bias zeros; stored
    # transposed as (dim, 96) for the kernel.  Likewise for the up-projection.
    wd = (0.01 * jax.random.normal(k_wd, (down, dim), dtype=jnp.float32)).T
    bd = jnp.zeros((down,), dtype=jnp.float32)
    wu = (0.01 * jax.random.normal(k_wu, (dim, down), dtype=jnp.float32)).T
    bu = jnp.zeros((dim,), dtype=jnp.float32)

    out = jax.block_until_ready(adapter_forward(x, wd, bd, wu, bu))
    ref = adapter_ref(x, wd, bd, wu, bu)
    assert out.shape == (B, S, dim)
    assert jnp.allclose(out, ref, atol=1e-5, rtol=1e-5), "f32 mismatch vs reference"

    # --- Test 2: bf16 streaming, lane-multiple dim (no activation pad/slice) -
    dim = 128
    k_x, k_wd, k_wu = jax.random.split(jax.random.PRNGKey(1), 3)
    xb = jax.random.normal(k_x, (B, S, dim), dtype=jnp.float32)
    wdb = (0.01 * jax.random.normal(k_wd, (down, dim), dtype=jnp.float32)).T
    bdb = jnp.zeros((down,), dtype=jnp.float32)
    wub = (0.01 * jax.random.normal(k_wu, (dim, down), dtype=jnp.float32)).T
    bub = jnp.zeros((dim,), dtype=jnp.float32)

    out_bf16 = jax.block_until_ready(
        adapter_forward(xb.astype(jnp.bfloat16), wdb, bdb, wub, bub))
    ref_bf16 = adapter_ref(xb.astype(jnp.bfloat16).astype(jnp.float32),
                           wdb, bdb, wub, bub)
    assert out_bf16.dtype == jnp.bfloat16
    assert out_bf16.shape == (B, S, dim)
    assert jnp.allclose(out_bf16.astype(jnp.float32), ref_bf16,
                        atol=3e-2, rtol=3e-2), "bf16 mismatch vs reference"

    print("KERNEL_OK")
</pallas_src>

<mosaic_0001>
module attributes {stable_mosaic.version = 11 : i64} {
  func.func @adapter_kernel(%arg0: i32, %arg1: memref<8x128xf32, #tpu.memory_space<vmem>>, %arg2: memref<128x128xf32, #tpu.memory_space<vmem>>, %arg3: memref<1x128xf32, #tpu.memory_space<vmem>>, %arg4: memref<128x128xf32, #tpu.memory_space<vmem>>, %arg5: memref<1x128xf32, #tpu.memory_space<vmem>>, %arg6: memref<8x128xf32, #tpu.memory_space<vmem>>) attributes {dimension_semantics = [#tpu.dimension_semantics<parallel>], iteration_bounds = array<i64: 2>, scalar_prefetch = 0 : i64, scratch_operands = 0 : i64, tpu.core_type = #tpu.core_type<tc>, window_params = [{transform_indices = @transform_0, window_bounds = array<i64: 8, 128>}, {pipeline_mode = #tpu.pipeline_mode<synchronous>, transform_indices = @transform_1, window_bounds = array<i64: 128, 128>}, {pipeline_mode = #tpu.pipeline_mode<synchronous>, transform_indices = @transform_2, window_bounds = array<i64: 1, 128>}, {pipeline_mode = #tpu.pipeline_mode<synchronous>, transform_indices = @transform_3, window_bounds = array<i64: 128, 128>}, {pipeline_mode = #tpu.pipeline_mode<synchronous>, transform_indices = @transform_4, window_bounds = array<i64: 1, 128>}, {transform_indices = @transform_5, window_bounds = array<i64: 8, 128>}]} {
    %c0 = arith.constant 0 : index
    %c0_0 = arith.constant 0 : index
    %0 = vector.load %arg1[%c0, %c0_0] : memref<8x128xf32, #tpu.memory_space<vmem>>, vector<8x128xf32>
    %c0_1 = arith.constant 0 : index
    %c0_2 = arith.constant 0 : index
    %1 = vector.load %arg2[%c0_1, %c0_2] : memref<128x128xf32, #tpu.memory_space<vmem>>, vector<128x128xf32>
    %cst = arith.constant dense<0.000000e+00> : vector<8x128xf32>
    %2 = tpu.matmul %0, %1, %cst {dimension_numbers = #tpu.dot_dimension_numbers<[1], [0], [0], [1], [0, 0, 1, 1], [], []>} : vector<8x128xf32>, vector<128x128xf32>, vector<8x128xf32> -> vector<8x128xf32>
    %c0_3 = arith.constant 0 : index
    %c0_4 = arith.constant 0 : index
    %3 = vector.load %arg3[%c0_3, %c0_4] : memref<1x128xf32, #tpu.memory_space<vmem>>, vector<1x128xf32>
    %4 = vector.broadcast %3 : vector<1x128xf32> to vector<8x128xf32>
    %5 = arith.addf %2, %4 : vector<8x128xf32>
    %cst_5 = arith.constant 0.000000e+00 : f32
    %6 = vector.broadcast %cst_5 : f32 to vector<8x128xf32>
    %7 = arith.maximumf %5, %6 : vector<8x128xf32>
    %c0_6 = arith.constant 0 : index
    %c0_7 = arith.constant 0 : index
    %8 = vector.load %arg4[%c0_6, %c0_7] : memref<128x128xf32, #tpu.memory_space<vmem>>, vector<128x128xf32>
    %cst_8 = arith.constant dense<0.000000e+00> : vector<8x128xf32>
    %9 = tpu.matmul %7, %8, %cst_8 {dimension_numbers = #tpu.dot_dimension_numbers<[1], [0], [0], [1], [0, 0, 1, 1], [], []>} : vector<8x128xf32>, vector<128x128xf32>, vector<8x128xf32> -> vector<8x128xf32>
    %10 = arith.addf %0, %9 : vector<8x128xf32>
    %c0_9 = arith.constant 0 : index
    %c0_10 = arith.constant 0 : index
    %11 = vector.load %arg5[%c0_9, %c0_10] : memref<1x128xf32, #tpu.memory_space<vmem>>, vector<1x128xf32>
    %12 = vector.broadcast %11 : vector<1x128xf32> to vector<8x128xf32>
    %13 = arith.addf %10, %12 : vector<8x128xf32>
    %c0_11 = arith.constant 0 : index
    %c0_12 = arith.constant 0 : index
    %14 = vector.load %arg6[%c0_11, %c0_12] : memref<8x128xf32, #tpu.memory_space<vmem>>, vector<8x128xf32>
    tpu.vector_store %arg6[%c0_11, %c0_12], %13 {strides = array<i32>} : memref<8x128xf32, #tpu.memory_space<vmem>>, vector<8x128xf32>,
    return
  }
  func.func @transform_0(%arg0: i32) -> (i32, i32) {
    %c0_i32 = arith.constant 0 : i32
    %c0_i32_0 = arith.constant 0 : i32
    return %arg0, %c0_i32 : i32, i32
  }
  func.func @transform_1(%arg0: i32) -> (i32, i32) {
    %c0_i32 = arith.constant 0 : i32
    %c0_i32_0 = arith.constant 0 : i32
    %c0_i32_1 = arith.constant 0 : i32
    return %c0_i32, %c0_i32_0 : i32, i32
  }
  func.func @transform_2(%arg0: i32) -> (i32, i32) {
    %c0_i32 = arith.constant 0 : i32
    %c0_i32_0 = arith.constant 0 : i32
    %c0_i32_1 = arith.constant 0 : i32
    return %c0_i32, %c0_i32_0 : i32, i32
  }
  func.func @transform_3(%arg0: i32) -> (i32, i32) {
    %c0_i32 = arith.constant 0 : i32
    %c0_i32_0 = arith.constant 0 : i32
    %c0_i32_1 = arith.constant 0 : i32
    return %c0_i32, %c0_i32_0 : i32, i32
  }
  func.func @transform_4(%arg0: i32) -> (i32, i32) {
    %c0_i32 = arith.constant 0 : i32
    %c0_i32_0 = arith.constant 0 : i32
    %c0_i32_1 = arith.constant 0 : i32
    return %c0_i32, %c0_i32_0 : i32, i32
  }
  func.func @transform_5(%arg0: i32) -> (i32, i32) {
    %c0_i32 = arith.constant 0 : i32
    %c0_i32_0 = arith.constant 0 : i32
    return %arg0, %c0_i32 : i32, i32
  }
}

</mosaic_0001>

<bundles_post_ra>
// kernel: adapter_forward.1
= control target key start
LH: loop header
LB: loop body
LE: loop exit
PB: predicated region body
PF: predicated region fallthrough
CT: control target
= control target key end

     0   :  { %s629_s18 = smov 0   ;;  %s793_s0 = inlined_call_operand.vmem [shape: f32[16,128], index: 0, kind: input, shape index: {}]   ;;  %s794_s1 = inlined_call_operand.vmem [shape: f32[128,128], index: 1, kind: input, shape index: {}]   ;;  %s795_s2 = inlined_call_operand.vmem [shape: f32[1,128], index: 2, kind: input, shape index: {}]   ;;  %s796_s3 = inlined_call_operand.vmem [shape: f32[128,128], index: 3, kind: input, shape index: {}]   ;;  %s797_s4 = inlined_call_operand.vmem [shape: f32[1,128], index: 4, kind: input, shape index: {}]   ;;  %s798_s5 = inlined_call_operand.vmem [shape: f32[16,128], index: 5, kind: output, shape index: {}]  }
   0x1 LB: > { %s464_s19 = sadd.s32 4294967295, %s595_s18   ;;  %p468_p0 = scmp.ge.s32.totalorder %s595_s18, 1  ;;  %s595_s18 = sphi %s629_s18, %s15_s18  }
   0x2   : > { %p186_p1 = scmp.lt.s32.totalorder %s595_s18, 3 }
   0x4   : > { %p187_p2 = pnand %p468_p0, %p186_p1 }
   0x5   : > { %p212_p3 = scmp.lt.s32.totalorder (!%p187_p2), %s464_s19, 1 }
   0x6   : > { %190 = sbr.rel (%p187_p2) target bundleno = 439 (0x1b7), region = 40 }
   0xb   : > { %v236_v0 = vld [vmem:[%s794_s1 + $0x78] sm:$0xff]  ;;  %v597_v1 = vmov 0.0   ;;  %v235_v2 = vld [vmem:[%s794_s1 + $0x70] sm:$0xff]  ;;  %vm598_vm0 = vmmov 0   ;;  %v234_v3 = vld [vmem:[%s794_s1 + $0x68] sm:$0xff]  ;;  %s800_s19 = smov (!%p212_p3, %s464_s19), 1 }
   0xc   : > { %509 = vmatprep.subr.mxu0 %v597_v1  ;;  %541 = vmatprep.mubr.msk.f32.mxu0 %vm598_vm0, %v597_v1  ;;  %v233_v4 = vld [vmem:[%s794_s1 + $0x60] sm:$0xff]  ;;  %v330_v5 = vld [vmem:[%s796_s3 + $0x78] sm:$0xff]  ;;  %v329_v6 = vld [vmem:[%s796_s3 + $0x70] sm:$0xff]  ;;  %s469_s22 = sshll.u32 %s800_s19, 3 }
   0xd   : > { %510 = vmatpush3.msra.mxu0 %v236_v0  ;;  %544 = vmatprep.subr.mxu1 %v597_v1  ;;  %v232_v7 = vld [vmem:[%s794_s1 + $0x58] sm:$0xff]  ;;  %v328_v8 = vld [vmem:[%s796_s3 + $0x68] sm:$0xff]  ;;  %v231_v9 = vld [vmem:[%s794_s1 + $0x50] sm:$0xff]  ;;  %s215_s6 = scalar_lea.vmem %s793_s0, %s469_s22  ;;  %s219_s26 = scalar_lea.vmem %s798_s5, %s469_s22 }
   0xe   : > { %511 = vmatprep.subr.mxu0 %v597_v1  ;;  %576 = vmatprep.mubr.msk.f32.mxu1 %vm598_vm0, %v597_v1  ;;  %v327_v10 = vld [vmem:[%s796_s3 + $0x60] sm:$0xff]  ;;  %v230_v11 = vld [vmem:[%s794_s1 + $0x48] sm:$0xff]  ;;  %v326_v12 = vld [vmem:[%s796_s3 + $0x58] sm:$0xff] }
   0xf   : > { %512 = vmatpush3.msra.mxu0 %v235_v2  ;;  %545 = vmatpush3.msra.mxu1 %v330_v5  ;;  %v229_v13 = vld [vmem:[%s794_s1 + $0x40] sm:$0xff]  ;;  %v325_v14 = vld [vmem:[%s796_s3 + $0x50] sm:$0xff]  ;;  %v228_v15 = vld [vmem:[%s794_s1 + $0x38] sm:$0xff] }
  0x10   : > { %513 = vmatprep.subr.mxu0 %v597_v1  ;;  %546 = vmatprep.subr.mxu1 %v597_v1  ;;  %v324_v16 = vld [vmem:[%s796_s3 + $0x48] sm:$0xff]  ;;  %v227_v17 = vld [vmem:[%s794_s1 + $0x30] sm:$0xff]  ;;  %v323_v18 = vld [vmem:[%s796_s3 + $0x40] sm:$0xff] }
  0x11   : > { %514 = vmatpush3.msra.mxu0 %v234_v3  ;;  %547 = vmatpush3.msra.mxu1 %v329_v6  ;;  %v226_v19 = vld [vmem:[%s794_s1 + $0x28] sm:$0xff]  ;;  %v322_v20 = vld [vmem:[%s796_s3 + $0x38] sm:$0xff]  ;;  %v225_v21 = vld [vmem:[%s794_s1 + $0x20] sm:$0xff] }
  0x12   : > { %515 = vmatprep.subr.mxu0 %v597_v1  ;;  %548 = vmatprep.subr.mxu1 %v597_v1  ;;  %v321_v22 = vld [vmem:[%s796_s3 + $0x30] sm:$0xff]  ;;  %v224_v23 = vld [vmem:[%s794_s1 + $0x18] sm:$0xff]  ;;  %v320_v24 = vld [vmem:[%s796_s3 + $0x28] sm:$0xff] }
  0x13   : > { %516 = vmatpush3.msra.mxu0 %v233_v4  ;;  %549 = vmatpush3.msra.mxu1 %v328_v8  ;;  %v223_v25 = vld [vmem:[%s794_s1 + $0x10] sm:$0xff]  ;;  %v319_v26 = vld [vmem:[%s796_s3 + $0x20] sm:$0xff]  ;;  %v222_v27 = vld [vmem:[%s794_s1 + $0x8] sm:$0xff] }
  0x14   : > { %517 = vmatprep.subr.mxu0 %v597_v1  ;;  %550 = vmatprep.subr.mxu1 %v597_v1  ;;  %v318_v28 = vld [vmem:[%s796_s3 + $0x18] sm:$0xff]  ;;  %v221_v29 = vld [vmem:[%s794_s1] sm:$0xff]  ;;  %v317_v31 = vld [vmem:[%s796_s3 + $0x10] sm:$0xff] }
  0x15   : > { %518 = vmatpush3.msra.mxu0 %v232_v7  ;;  %551 = vmatpush3.msra.mxu1 %v327_v10  ;;  %v220_v30 = vld [vmem:[%s215_s6] sm:$0xff]  ;;  %v316_v32 = vld [vmem:[%s796_s3 + $0x8] sm:$0xff] }
  0x16   : > { %519 = vmatprep.subr.mxu0 %v597_v1  ;;  %552 = vmatprep.subr.mxu1 %v597_v1  ;;  %v315_v33 = vld [vmem:[%s796_s3] sm:$0xff] }
  0x17   : > { %520 = vmatpush3.msra.mxu0 %v231_v9  ;;  %553 = vmatpush3.msra.mxu1 %v326_v12  ;;  %v471_v34 = vld [vmem:[%s795_s2] ss:$0 sm:$0xff] }
  0x18   : > { %521 = vmatprep.subr.mxu0 %v597_v1  ;;  %554 = vmatprep.subr.mxu1 %v597_v1  ;;  %v472_v40 = vld [vmem:[%s797_s4] ss:$0 sm:$0xff] }
  0x19   : > { %522 = vmatpush3.msra.mxu0 %v230_v11  ;;  %555 = vmatpush3.msra.mxu1 %v325_v14 }
  0x1a   : > { %523 = vmatprep.subr.mxu0 %v597_v1  ;;  %556 = vmatprep.subr.mxu1 %v597_v1 }
  0x1b   : > { %524 = vmatpush3.msra.mxu0 %v229_v13  ;;  %557 = vmatpush3.msra.mxu1 %v324_v16 }
  0x1c   : > { %525 = vmatprep.subr.mxu0 %v597_v1  ;;  %558 = vmatprep.subr.mxu1 %v597_v1 }
  0x1d   : > { %526 = vmatpush3.msra.mxu0 %v228_v15  ;;  %559 = vmatpush3.msra.mxu1 %v323_v18 }
  0x1e   : > { %527 = vmatprep.subr.mxu0 %v597_v1  ;;  %560 = vmatprep.subr.mxu1 %v597_v1 }
  0x1f   : > { %528 = vmatpush3.msra.mxu0 %v227_v17  ;;  %561 = vmatpush3.msra.mxu1 %v322_v20 }
  0x20   : > { %529 = vmatprep.subr.mxu0 %v597_v1  ;;  %562 = vmatprep.subr.mxu1 %v597_v1 }
  0x21   : > { %530 = vmatpush3.msra.mxu0 %v226_v19  ;;  %563 = vmatpush3.msra.mxu1 %v321_v22 }
  0x22   : > { %531 = vmatprep.subr.mxu0 %v597_v1  ;;  %564 = vmatprep.subr.mxu1 %v597_v1 }
  0x23   : > { %532 = vmatpush3.msra.mxu0 %v225_v21  ;;  %565 = vmatpush3.msra.mxu1 %v320_v24 }
  0x24   : > { %533 = vmatprep.subr.mxu0 %v597_v1  ;;  %566 = vmatprep.subr.mxu1 %v597_v1 }
  0x25   : > { %534 = vmatpush3.msra.mxu0 %v224_v23  ;;  %567 = vmatpush3.msra.mxu1 %v319_v26 }
  0x26   : > { %535 = vmatprep.subr.mxu0 %v597_v1  ;;  %568 = vmatprep.subr.mxu1 %v597_v1 }
  0x27   : > { %536 = vmatpush3.msra.mxu0 %v223_v25  ;;  %569 = vmatpush3.msra.mxu1 %v318_v28 }
  0x28   : > { %537 = vmatprep.subr.mxu0 %v597_v1  ;;  %570 = vmatprep.subr.mxu1 %v597_v1 }
  0x29   : > { %538 = vmatpush3.msra.mxu0 %v222_v27  ;;  %571 = vmatpush3.msra.mxu1 %v317_v31 }
  0x2a   : > { %539 = vmatprep.subr.mxu0 %v597_v1  ;;  %572 = vmatprep.subr.mxu1 %v597_v1 }
  0x2b   : > { %540 = vmatpush3.msra.mxu0 %v221_v29  ;;  %573 = vmatpush3.msra.mxu1 %v316_v32 }
  0x2c   : > { %542 = vmatmul.mubr.f32.vlgmr.msra.gmra.mxu0 %v220_v30  ;;  %574 = vmatprep.subr.mxu1 %v597_v1 }
  0x2d   : > { %575 = vmatpush3.msra.mxu1 %v315_v33 }
  0xec   : > { %v310_v35 = vpop.f32.mrf.mxu0 }
  0xed   : > { %v311_v36 = vadd.f32 %v471_v34, %v310_v35 }
  0xee   : > { %v543_v37 = vpop.f32.mrf.mxu0 }
  0xef   : > { %v314_v38 = vmax.f32 %v311_v36, 0.0 }
  0xf1   : > { %577 = vmatmul.mubr.f32.vlgmr.msra.gmra.mxu1 %v314_v38 }
 0x1b1   : > { %v397_v39 = vpop.f32.mrf.mxu1 }
 0x1b2   : > { %v401_v41 = vadd.f32 %v397_v39, %v220_v30 }
 0x1b3   : > { %v578_v42 = vpop.f32.mrf.mxu1 }
 0x1b4   : > { %v409_v43 = vadd.f32 %v472_v40, %v401_v41 }
 0x1b6   : > { %410 = vst [vmem:[%s219_s26] sm:$0xff] %v409_v43 }
 0x1b7 PF: > { %s15_s18 = sadd.s32 1, %s595_s18  }
 0x1b8   : > { %p12_p4 = scmp.ge.s32.totalorder %s15_s18, 4  }
 0x1ba   :  { %14 = sbr.rel (!%p12_p4) target bundleno = 1 (0x1), region = 70 }

</bundles_post_ra>
